<compile_context>
chip_gen: v6e
topology: v6e:2x2x1
jax: 0.10.0
libtpu: 0.0.40
codegen_flags: <defaults>
</compile_context>

<pallas_src>
import math
from typing import NamedTuple

import jax
import jax.numpy as jnp
from jax.experimental import pallas as pl
from jax.experimental.pallas import tpu as pltpu

_LANE = 128
_SUBLANE = 8
_MXU_ALIGN = 256   # MXU width on v6e/v7x; also a multiple of v5e's 128.


def _round_up(n, m):
    return ((n + m - 1) // m) * m


def _pad_to(a, shape):
    """Zero-pad trailing edges of `a` up to `shape` (no-op if already equal)."""
    if tuple(a.shape) == tuple(shape):
        return a
    return jnp.pad(a, [(0, t - s) for s, t in zip(a.shape, shape)])


def _vmem_capacity_bytes():
    """Physical VMEM per TensorCore (conservative fallback if query fails)."""
    try:
        info = pltpu.get_tpu_info()
        for attr in ("vmem_capacity_bytes", "vmem_size_bytes", "vmem_bytes"):
            cap = getattr(info, attr, None)
            if cap:
                return int(cap)
    except Exception:
        pass
    return 64 * 1024 * 1024  # v7x per-TC size; safe lower bound everywhere.


def _tile_vmem_bytes(tm, tk, d_model_p, in_item, out_item, weight_buffers):
    """Estimate of the pipelined working set for one grid step."""
    wbuf = weight_buffers * 2 * tk * d_model_p * in_item   # W1 + W2 tiles
    xbuf = 2 * tm * d_model_p * in_item                    # x tile (double-buffered)
    obuf = 2 * tm * d_model_p * out_item                   # out tile (double-buffered)
    acc = tm * d_model_p * 4                               # f32 accumulator scratch
    h = tm * tk * 4                                        # f32 fc1 activation temp
    bias = weight_buffers * tk * 4 + 2 * d_model_p * 4
    return wbuf + xbuf + obuf + acc + h + bias


class FFNPlan(NamedTuple):
    tm: int
    tk: int
    M: int
    M_p: int
    d_model: int
    d_model_p: int
    d_ff: int
    d_ff_p: int
    compute_dtype: jnp.dtype
    out_dtype: jnp.dtype
    vmem_limit_bytes: int
    weight_buffers: int


def plan_ffn(M, d_model, d_ff, *, out_dtype, compute_dtype=None, tm=512,
             tk=512, weight_buffers=2):
    """Per-generation tile / VMEM-limit planning for the fused FFN."""
    out_dtype = jnp.dtype(out_dtype)
    cdt = jnp.dtype(out_dtype if compute_dtype is None else compute_dtype)
    in_item, out_item = cdt.itemsize, out_dtype.itemsize

    # Keep output last dim lane-dense (no masked vst) for real model sizes.
    d_model_p = d_model if d_model % _LANE == 0 else _round_up(d_model, _LANE)

    # Scoped-VMEM limit from physical capacity: ~100 MiB on the 128 MiB chips
    # (v5e/v6e), ~52 MiB on the 64 MiB-per-TC chip (v7x).
    vmem_cap = _vmem_capacity_bytes()
    vmem_limit = min(int(vmem_cap * 0.80), 100 * 1024 * 1024)
    budget = vmem_limit - 4 * 1024 * 1024  # headroom for compiler internals

    tm_eff = max(_SUBLANE, min(_round_up(tm, _SUBLANE), _round_up(M, _SUBLANE)))
    if d_ff <= tk:
        tk_eff = _round_up(d_ff, _SUBLANE)       # one K step, block == full dim
    else:
        tk_eff = _round_up(tk, _MXU_ALIGN)       # 256-aligned K tiles

    def fits(tm_, tk_):
        return _tile_vmem_bytes(tm_, tk_, d_model_p, in_item, out_item,
                                weight_buffers) <= budget

    # Shrink the d_ff tile first (only adds K steps), then the row tile (which
    # costs extra weight re-reads), until the working set fits the budget.
    while not fits(tm_eff, tk_eff):
        if tk_eff > _MXU_ALIGN:
            tk_eff = max(_MXU_ALIGN, _round_up(tk_eff // 2, _MXU_ALIGN))
        elif tm_eff > _SUBLANE:
            tm_eff = max(_SUBLANE, _round_up(tm_eff // 2, _SUBLANE))
        else:
            break  # smallest sensible tiles; compiler will report if still too big

    M_p = _round_up(M, tm_eff)
    d_ff_p = _round_up(d_ff, tk_eff)
    return FFNPlan(tm=tm_eff, tk=tk_eff, M=M, M_p=M_p, d_model=d_model,
                   d_model_p=d_model_p, d_ff=d_ff, d_ff_p=d_ff_p,
                   compute_dtype=cdt, out_dtype=out_dtype,
                   vmem_limit_bytes=int(vmem_limit),
                   weight_buffers=weight_buffers)


def prepare_ffn_params(w1, b1, w2, b2, plan):
    """One-time transpose / pad / cast of the fc1+fc2 params (cache & reuse).

    Returns (w1_t, b1_p, w2_t, b2_p) with
      w1_t: (d_model_p, d_ff_p), w2_t: (d_ff_p, d_model_p) in compute dtype,
      b1_p: (1, d_ff_p), b2_p: (1, d_model_p) in f32.
    """
    cdt = plan.compute_dtype
    w1_t = _pad_to(jnp.transpose(w1), (plan.d_model_p, plan.d_ff_p)).astype(cdt)
    w2_t = _pad_to(jnp.transpose(w2), (plan.d_ff_p, plan.d_model_p)).astype(cdt)
    b1_p = _pad_to(b1.reshape(1, plan.d_ff), (1, plan.d_ff_p)).astype(jnp.float32)
    b2_p = _pad_to(b2.reshape(1, plan.d_model), (1, plan.d_model_p)).astype(jnp.float32)
    return w1_t, b1_p, w2_t, b2_p


def ffn_kernel(x_ref, w1_ref, b1_ref, w2_ref, b2_ref, o_ref, acc_ref):
    """One (row-tile, d_ff-tile) grid step of the fused FFN.

    x_ref : (tm, d_model_p)   activations (compute dtype)
    w1_ref: (d_model_p, tk)   fc1 weight K-tile, pre-transposed (K on sublanes)
    b1_ref: (1, tk)           fc1 bias K-tile (f32)
    w2_ref: (tk, d_model_p)   fc2 weight K-tile, pre-transposed (K on sublanes)
    b2_ref: (1, d_model_p)    fc2 bias (f32)
    o_ref : (tm, d_model_p)   output tile (written on last K step)
    acc_ref: (tm, d_model_p)  f32 accumulator scratch, resident across K axis
    """
    k = pl.program_id(1)

    @pl.when(k == 0)
    def _init():
        acc_ref[...] = jnp.zeros_like(acc_ref)

    # fc1 on this d_ff tile: plain (M,K)@(K,N) matmul on the MXU, f32 accum.
    h = jnp.dot(x_ref[...], w1_ref[...], preferred_element_type=jnp.float32)
    h = jnp.maximum(h + b1_ref[...], 0.0)            # bias + ReLU in f32 (VPU)

    # Partial fc2: contract this d_ff tile, accumulate into the f32 scratch.
    acc_ref[...] += jnp.dot(h.astype(w2_ref.dtype), w2_ref[...],
                            preferred_element_type=jnp.float32)

    @pl.when(k == pl.num_programs(1) - 1)
    def _finalize():
        o_ref[...] = (acc_ref[...] + b2_ref[...]).astype(o_ref.dtype)


def position_wise_feed_forward(x, w1, b1, w2, b2, *, tm=512, tk=512,
                               compute_dtype=None, weight_buffers=2,
                               plan=None, prepared=None):
    """Fused FFN: relu(x @ w1.T + b1) @ w2.T + b2.

    x : (B, S, d_model)
    w1: (d_ff, d_model), b1: (d_ff,)      -- PyTorch nn.Linear layout
    w2: (d_model, d_ff), b2: (d_model,)
    compute_dtype: e.g. jnp.bfloat16 for bf16 MXU operands (f32 accumulation);
                   recommended on v5e.
    plan / prepared: reuse plan_ffn() / prepare_ffn_params() results across
                     calls to avoid re-padding / re-casting the weights.
    """
    orig_dtype = x.dtype
    B, S, d_model = x.shape
    d_ff = w1.shape[0]
    M = B * S

    if plan is None:
        plan = plan_ffn(M, d_model, d_ff, out_dtype=orig_dtype,
                        compute_dtype=compute_dtype, tm=tm, tk=tk,
                        weight_buffers=weight_buffers)
    assert plan.M == M and plan.d_model == d_model and plan.d_ff == d_ff

    if prepared is None:
        prepared = prepare_ffn_params(w1, b1, w2, b2, plan)
    w1_t, b1_p, w2_t, b2_p = prepared
    assert w1_t.shape == (plan.d_model_p, plan.d_ff_p)
    assert w2_t.shape == (plan.d_ff_p, plan.d_model_p)

    cdt = plan.compute_dtype
    x2 = _pad_to(x.reshape(M, d_model), (plan.M_p, plan.d_model_p)).astype(cdt)

    grid = (plan.M_p // plan.tm, plan.d_ff_p // plan.tk)

    # Optional extra weight buffering (v5e/v6e with spare VMEM only).
    w_kw = ({} if plan.weight_buffers == 2
            else dict(pipeline_mode=pl.Buffered(plan.weight_buffers)))
    in_specs = [
        pl.BlockSpec((plan.tm, plan.d_model_p), lambda i, k: (i, 0)),          # x rows
        pl.BlockSpec((plan.d_model_p, plan.tk), lambda i, k: (0, k), **w_kw),  # W1^T K-tile
        pl.BlockSpec((1, plan.tk), lambda i, k: (0, k)),                       # b1 K-tile
        pl.BlockSpec((plan.tk, plan.d_model_p), lambda i, k: (k, 0), **w_kw),  # W2^T K-tile
        pl.BlockSpec((1, plan.d_model_p), lambda i, k: (0, 0)),                # b2
    ]

    in_item = jnp.dtype(cdt).itemsize
    out_item = jnp.dtype(orig_dtype).itemsize
    grid_m = grid[0]
    weight_bytes = (w1_t.size + w2_t.size) * in_item
    flops = 4 * plan.M_p * plan.d_model_p * plan.d_ff_p      # two matmuls
    bytes_accessed = int(
        plan.M_p * plan.d_model_p * in_item                  # x read
        + grid_m * weight_bytes                              # W1+W2 once per row tile
        + plan.M_p * plan.d_model_p * out_item               # output write
        + grid_m * (plan.d_ff_p + plan.d_model_p) * 4)       # biases per row tile

    out = pl.pallas_call(
        ffn_kernel,
        out_shape=jax.ShapeDtypeStruct((plan.M_p, plan.d_model_p), orig_dtype),
        grid_spec=pltpu.PrefetchScalarGridSpec(
            num_scalar_prefetch=0,
            grid=grid,
            in_specs=in_specs,
            out_specs=pl.BlockSpec((plan.tm, plan.d_model_p), lambda i, k: (i, 0)),
            scratch_shapes=[pltpu.VMEM((plan.tm, plan.d_model_p), jnp.float32)],
        ),
        compiler_params=pltpu.CompilerParams(
            # rows parallel (shards across v7x's 2 TCs), d_ff reduction arbitrary
            dimension_semantics=("parallel", "arbitrary"),
            vmem_limit_bytes=plan.vmem_limit_bytes,
        ),
        cost_estimate=pl.CostEstimate(
            flops=flops, transcendentals=0, bytes_accessed=bytes_accessed),
    )(x2, w1_t, b1_p, w2_t, b2_p)

    return out[:M, :d_model].reshape(B, S, d_model)


def init_linear_params(key, out_features, in_features):
    """Deterministic init mimicking torch.nn.Linear defaults."""
    kw, kb = jax.random.split(key)
    bound = 1.0 / math.sqrt(in_features)
    w = jax.random.uniform(kw, (out_features, in_features),
                           minval=-bound, maxval=bound, dtype=jnp.float32)
    b = jax.random.uniform(kb, (out_features,),
                           minval=-bound, maxval=bound, dtype=jnp.float32)
    return w, b


if __name__ == "__main__":
    key = jax.random.PRNGKey(0)
    k_x, k_fc1, k_fc2 = jax.random.split(key, 3)

    batch, seq, d_model, d_ff = 2, 8, 32, 64
    x = jax.random.normal(k_x, (batch, seq, d_model), dtype=jnp.float32)

    w1, b1 = init_linear_params(k_fc1, d_ff, d_model)   # fc1: d_model -> d_ff
    w2, b2 = init_linear_params(k_fc2, d_model, d_ff)   # fc2: d_ff -> d_model

    # pure-JAX reference
    ref = jnp.maximum(x @ w1.T + b1, 0.0) @ w2.T + b2

    # f32 path with once-prepared (pre-transposed / padded) weights -- tight check
    plan_f32 = plan_ffn(batch * seq, d_model, d_ff, out_dtype=x.dtype)
    params_f32 = jax.block_until_ready(prepare_ffn_params(w1, b1, w2, b2, plan_f32))
    y = position_wise_feed_forward(x, w1, b1, w2, b2,
                                   plan=plan_f32, prepared=params_f32)
    y = jax.block_until_ready(y)
    assert y.shape == (batch, seq, d_model)
    assert jnp.allclose(y, ref, atol=1e-5, rtol=1e-5)

    # bf16 MXU-operand path (f32 accumulation) -- loose check
    y_bf16 = position_wise_feed_forward(x, w1, b1, w2, b2,
                                        compute_dtype=jnp.bfloat16)
    y_bf16 = jax.block_until_ready(y_bf16)
    assert y_bf16.shape == (batch, seq, d_model)
    assert float(jnp.max(jnp.abs(y_bf16 - ref))) < 0.1

    print("KERNEL_OK")
</pallas_src>

<mosaic_0001>
module attributes {stable_mosaic.version = 11 : i64} {
  func.func @ffn_kernel(%arg0: i32, %arg1: i32, %arg2: memref<16x128xf32, #tpu.memory_space<vmem>>, %arg3: memref<128x64xf32, #tpu.memory_space<vmem>>, %arg4: memref<1x64xf32, #tpu.memory_space<vmem>>, %arg5: memref<64x128xf32, #tpu.memory_space<vmem>>, %arg6: memref<1x128xf32, #tpu.memory_space<vmem>>, %arg7: memref<16x128xf32, #tpu.memory_space<vmem>>, %arg8: memref<16x128xf32, #tpu.memory_space<vmem>>) attributes {dimension_semantics = [#tpu.dimension_semantics<parallel>, #tpu.dimension_semantics<arbitrary>], iteration_bounds = array<i64: 1, 1>, scalar_prefetch = 0 : i64, scratch_operands = 1 : i64, tpu.core_type = #tpu.core_type<tc>, window_params = [{transform_indices = @transform_0, window_bounds = array<i64: 16, 128>}, {transform_indices = @transform_1, window_bounds = array<i64: 128, 64>}, {transform_indices = @transform_2, window_bounds = array<i64: 1, 64>}, {transform_indices = @transform_3, window_bounds = array<i64: 64, 128>}, {pipeline_mode = #tpu.pipeline_mode<synchronous>, transform_indices = @transform_4, window_bounds = array<i64: 1, 128>}, {transform_indices = @transform_5, window_bounds = array<i64: 16, 128>}]} {
    %c0_i32 = arith.constant 0 : i32
    %0 = arith.cmpi eq, %arg1, %c0_i32 : i32
    %1 = arith.extui %0 : i1 to i32
    %c0_i32_0 = arith.constant 0 : i32
    %2 = arith.cmpi ne, %1, %c0_i32_0 : i32
    scf.if %2 {
      %cst_16 = arith.constant 0.000000e+00 : f32
      %19 = vector.broadcast %cst_16 : f32 to vector<16x128xf32>
      %c0_17 = arith.constant 0 : index
      %c0_18 = arith.constant 0 : index
      %20 = vector.load %arg8[%c0_17, %c0_18] : memref<16x128xf32, #tpu.memory_space<vmem>>, vector<16x128xf32>
      tpu.vector_store %arg8[%c0_17, %c0_18], %19 {strides = array<i32>} : memref<16x128xf32, #tpu.memory_space<vmem>>, vector<16x128xf32>,
    } else {
    }
    %c0 = arith.constant 0 : index
    %c0_1 = arith.constant 0 : index
    %3 = vector.load %arg2[%c0, %c0_1] : memref<16x128xf32, #tpu.memory_space<vmem>>, vector<16x128xf32>
    %c0_2 = arith.constant 0 : index
    %c0_3 = arith.constant 0 : index
    %4 = vector.load %arg3[%c0_2, %c0_3] : memref<128x64xf32, #tpu.memory_space<vmem>>, vector<128x64xf32>
    %cst = arith.constant dense<0.000000e+00> : vector<16x64xf32>
    %5 = tpu.matmul %3, %4, %cst {dimension_numbers = #tpu.dot_dimension_numbers<[1], [0], [0], [1], [0, 0, 1, 1], [], []>} : vector<16x128xf32>, vector<128x64xf32>, vector<16x64xf32> -> vector<16x64xf32>
    %c0_4 = arith.constant 0 : index
    %c0_5 = arith.constant 0 : index
    %6 = vector.load %arg4[%c0_4, %c0_5] : memref<1x64xf32, #tpu.memory_space<vmem>>, vector<1x64xf32>
    %7 = vector.broadcast %6 : vector<1x64xf32> to vector<16x64xf32>
    %8 = arith.addf %5, %7 : vector<16x64xf32>
    %cst_6 = arith.constant 0.000000e+00 : f32
    %9 = vector.broadcast %cst_6 : f32 to vector<16x64xf32>
    %10 = arith.maximumf %8, %9 : vector<16x64xf32>
    %c0_7 = arith.constant 0 : index
    %c0_8 = arith.constant 0 : index
    %11 = vector.load %arg8[%c0_7, %c0_8] : memref<16x128xf32, #tpu.memory_space<vmem>>, vector<16x128xf32>
    %c0_9 = arith.constant 0 : index
    %c0_10 = arith.constant 0 : index
    %12 = vector.load %arg5[%c0_9, %c0_10] : memref<64x128xf32, #tpu.memory_space<vmem>>, vector<64x128xf32>
    %cst_11 = arith.constant dense<0.000000e+00> : vector<16x128xf32>
    %13 = tpu.matmul %10, %12, %cst_11 {dimension_numbers = #tpu.dot_dimension_numbers<[1], [0], [0], [1], [0, 0, 1, 1], [], []>} : vector<16x64xf32>, vector<64x128xf32>, vector<16x128xf32> -> vector<16x128xf32>
    %14 = arith.addf %11, %13 : vector<16x128xf32>
    %c0_12 = arith.constant 0 : index
    %c0_13 = arith.constant 0 : index
    %15 = vector.load %arg8[%c0_12, %c0_13] : memref<16x128xf32, #tpu.memory_space<vmem>>, vector<16x128xf32>
    tpu.vector_store %arg8[%c0_12, %c0_13], %14 {strides = array<i32>} : memref<16x128xf32, #tpu.memory_space<vmem>>, vector<16x128xf32>,
    %c0_i32_14 = arith.constant 0 : i32
    %16 = arith.cmpi eq, %arg1, %c0_i32_14 : i32
    %17 = arith.extui %16 : i1 to i32
    %c0_i32_15 = arith.constant 0 : i32
    %18 = arith.cmpi ne, %17, %c0_i32_15 : i32
    scf.if %18 {
      %c0_16 = arith.constant 0 : index
      %c0_17 = arith.constant 0 : index
      %19 = vector.load %arg8[%c0_16, %c0_17] : memref<16x128xf32, #tpu.memory_space<vmem>>, vector<16x128xf32>
      %c0_18 = arith.constant 0 : index
      %c0_19 = arith.constant 0 : index
      %20 = vector.load %arg6[%c0_18, %c0_19] : memref<1x128xf32, #tpu.memory_space<vmem>>, vector<1x128xf32>
      %21 = vector.broadcast %20 : vector<1x128xf32> to vector<16x128xf32>
      %22 = arith.addf %19, %21 : vector<16x128xf32>
      %c0_20 = arith.constant 0 : index
      %c0_21 = arith.constant 0 : index
      %23 = vector.load %arg7[%c0_20, %c0_21] : memref<16x128xf32, #tpu.memory_space<vmem>>, vector<16x128xf32>
      tpu.vector_store %arg7[%c0_20, %c0_21], %22 {strides = array<i32>} : memref<16x128xf32, #tpu.memory_space<vmem>>, vector<16x128xf32>,
    } else {
    }
    return
  }
  func.func @transform_0(%arg0: i32, %arg1: i32) -> (i32, i32) {
    %c0_i32 = arith.constant 0 : i32
    %c0_i32_0 = arith.constant 0 : i32
    return %arg0, %c0_i32 : i32, i32
  }
  func.func @transform_1(%arg0: i32, %arg1: i32) -> (i32, i32) {
    %c0_i32 = arith.constant 0 : i32
    %c0_i32_0 = arith.constant 0 : i32
    return %c0_i32, %arg1 : i32, i32
  }
  func.func @transform_2(%arg0: i32, %arg1: i32) -> (i32, i32) {
    %c0_i32 = arith.constant 0 : i32
    %c0_i32_0 = arith.constant 0 : i32
    return %c0_i32, %arg1 : i32, i32
  }
  func.func @transform_3(%arg0: i32, %arg1: i32) -> (i32, i32) {
    %c0_i32 = arith.constant 0 : i32
    %c0_i32_0 = arith.constant 0 : i32
    return %arg1, %c0_i32 : i32, i32
  }
  func.func @transform_4(%arg0: i32, %arg1: i32) -> (i32, i32) {
    %c0_i32 = arith.constant 0 : i32
    %c0_i32_0 = arith.constant 0 : i32
    %c0_i32_1 = arith.constant 0 : i32
    return %c0_i32, %c0_i32_0 : i32, i32
  }
  func.func @transform_5(%arg0: i32, %arg1: i32) -> (i32, i32) {
    %c0_i32 = arith.constant 0 : i32
    %c0_i32_0 = arith.constant 0 : i32
    return %arg0, %c0_i32 : i32, i32
  }
}

</mosaic_0001>

<bundles_post_ra>
// kernel: tpu_custom_call.1
= control target key start
LH: loop header
LB: loop body
LE: loop exit
PB: predicated region body
PF: predicated region fallthrough
CT: control target
= control target key end

     0   :  { %s488_s0 = inlined_call_operand.vmem [shape: f32[16,128], index: 0, kind: input, shape index: {}]   ;;  %s489_s1 = inlined_call_operand.vmem [shape: f32[128,64], index: 1, kind: input, shape index: {}]   ;;  %s490_s2 = inlined_call_operand.vmem [shape: f32[1,64], index: 2, kind: input, shape index: {}]   ;;  %s491_s3 = inlined_call_operand.vmem [shape: f32[64,128], index: 3, kind: input, shape index: {}]   ;;  %s492_s4 = inlined_call_operand.vmem [shape: f32[1,128], index: 4, kind: input, shape index: {}]   ;;  %s493_s5 = inlined_call_operand.hbm [shape: f32[16,128], index: 5, kind: output, shape index: {}]  }
   0x1   :  { %v44_v0 = vld [vmem:[%s489_s1 + $0x78] sm:$0xff]  ;;  %v43_v1 = vld [vmem:[%s489_s1 + $0x70] sm:$0xff]  ;;  %v42_v2 = vld [vmem:[%s489_s1 + $0x68] sm:$0xff] }
   0x2   :  { %289 = vmatprep.subr.mxu0 %v44_v0  ;;  %v41_v3 = vld [vmem:[%s489_s1 + $0x60] sm:$0xff]  ;;  %v40_v5 = vld [vmem:[%s489_s1 + $0x58] sm:$0xff]  ;;  %v137_v7 = vld [vmem:[%s491_s3 + $0x30] sm:$0xff] }
   0x3   :  { %290 = vmatpush3.msra.mxu0 %v44_v0  ;;  %v27_v4 = vld [vmem:[%s488_s0] sm:$0xff]  ;;  %v138_v6 = vld [vmem:[%s491_s3 + $0x38] sm:$0xff] }
   0x4   :  { %291 = vmatprep.subr.mxu0 %v43_v1  ;;  %321 = vmatprep.mubr.f32.mxu0 %v27_v4 }
   0x5   :  { %292 = vmatpush3.msra.mxu0 %v43_v1  ;;  %324 = vmatprep.subr.mxu1 %v138_v6 }
   0x6   :  { %293 = vmatprep.subr.mxu0 %v42_v2 }
   0x7   :  { %294 = vmatpush3.msra.mxu0 %v42_v2 }
   0x8   :  { %295 = vmatprep.subr.mxu0 %v41_v3 }
   0x9   :  { %10 = vsyncpa [#allocation4], 0  ;;  %296 = vmatpush3.msra.mxu0 %v41_v3  ;;  %v39_v8 = vld [vmem:[%s489_s1 + $0x50] sm:$0xff]  ;;  %325 = vmatpush3.msra.mxu1 %v138_v6  ;;  %v136_v9 = vld [vmem:[%s491_s3 + $0x28] sm:$0xff]  ;;  %vm139_vm0 = vcmask 523264  }
   0xa   :  { %297 = vmatprep.subr.mxu0 %v40_v5  ;;  %326 = vmatprep.subr.mxu1 %v137_v7  ;;  %v38_v10 = vld [vmem:[%s489_s1 + $0x48] sm:$0xff]  ;;  %v135_v11 = vld [vmem:[%s491_s3 + $0x20] sm:$0xff]  ;;  %v36_v13 = vld [vmem:[%s489_s1 + $0x38] sm:$0xff] }
   0xb   :  { %298 = vmatpush3.msra.mxu0 %v40_v5  ;;  %327 = vmatpush3.msra.mxu1 %v137_v7  ;;  %v37_v12 = vld [vmem:[%s489_s1 + $0x40] sm:$0xff]  ;;  %v35_v14 = vld [vmem:[%s489_s1 + $0x30] sm:$0xff]  ;;  %v34_v15 = vld [vmem:[%s489_s1 + $0x28] sm:$0xff] }
   0xc   :  { %299 = vmatprep.subr.mxu0 %v39_v8  ;;  %328 = vmatprep.subr.mxu1 %v136_v9  ;;  %v33_v16 = vld [vmem:[%s489_s1 + $0x20] sm:$0xff]  ;;  %v32_v17 = vld [vmem:[%s489_s1 + $0x18] sm:$0xff]  ;;  %v31_v18 = vld [vmem:[%s489_s1 + $0x10] sm:$0xff] }
   0xd   :  { %300 = vmatpush3.msra.mxu0 %v39_v8  ;;  %329 = vmatpush3.msra.mxu1 %v136_v9  ;;  %v30_v19 = vld [vmem:[%s489_s1 + $0x8] sm:$0xff]  ;;  %v29_v20 = vld [vmem:[%s489_s1] sm:$0xff]  ;;  %v134_v22 = vld [vmem:[%s491_s3 + $0x18] sm:$0xff] }
   0xe   :  { %301 = vmatprep.subr.mxu0 %v38_v10  ;;  %330 = vmatprep.subr.mxu1 %v135_v11  ;;  %v28_v21 = vld [vmem:[%s488_s0 + $0x8] sm:$0xff]  ;;  %v133_v23 = vld [vmem:[%s491_s3 + $0x10] sm:$0xff]  ;;  %v131_v25 = vld [vmem:[%s491_s3] sm:$0xff] }
   0xf   :  { %302 = vmatpush3.msra.mxu0 %v38_v10  ;;  %331 = vmatpush3.msra.mxu1 %v135_v11  ;;  %v132_v24 = vld [vmem:[%s491_s3 + $0x8] sm:$0xff]  ;;  %v257_v26 = vld [vmem:[%s490_s2] ss:$0 sm:$0xff]  ;;  %s368_s3 = smov [#allocation3]  }
  0x10   :  { %303 = vmatprep.subr.mxu0 %v37_v12  ;;  %332 = vmatprep.subr.mxu1 %v134_v22  ;;  %v260_v33 = vld [vmem:[%s492_s4] ss:$0 sm:$0xff]  ;;  %s246_s22 = sshll.u32 %s368_s3, 4  ;;  %s247_s22 = int_to_ptr.vmem [resolvable:$true] %s246_s22 }
  0x11   :  { %304 = vmatpush3.msra.mxu0 %v37_v12  ;;  %333 = vmatpush3.msra.mxu1 %v134_v22  ;;  %s346_s2 = scalar_lea.vmem %s247_s22, 256  ;;  %p351_p1 = scmp.lt.s32.totalorder %s247_s22, %s247_s22 }
  0x12   :  { %305 = vmatprep.subr.mxu0 %v36_v13  ;;  %334 = vmatprep.subr.mxu1 %v133_v23  ;;  %p347_p0 = scmp.ne.s32.totalorder %s247_s22, %s346_s2  ;;  %p352_p2 = scmp.lt.s32.totalorder %s346_s2, %s346_s2 }
  0x13   :  { %306 = vmatpush3.msra.mxu0 %v36_v13  ;;  %335 = vmatpush3.msra.mxu1 %v133_v23 }
  0x14   :  { %307 = vmatprep.subr.mxu0 %v35_v14  ;;  %336 = vmatprep.subr.mxu1 %v132_v24  ;;  %p353_p3 = por %p352_p2, %p351_p1 }
  0x15   :  { %308 = vmatpush3.msra.mxu0 %v35_v14  ;;  %337 = vmatpush3.msra.mxu1 %v132_v24 }
  0x16   :  { %309 = vmatprep.subr.mxu0 %v34_v15  ;;  %338 = vmatprep.subr.mxu1 %v131_v25  ;;  %p354_p4 = pnand %p353_p3, %p347_p0 }
  0x17   :  { %310 = vmatpush3.msra.mxu0 %v34_v15  ;;  %339 = vmatpush3.msra.mxu1 %v131_v25 }
  0x18   :  { %311 = vmatprep.subr.mxu0 %v33_v16 }
  0x19   :  { %312 = vmatpush3.msra.mxu0 %v33_v16 }
  0x1a   :  { %313 = vmatprep.subr.mxu0 %v32_v17 }
  0x1b   :  { %314 = vmatpush3.msra.mxu0 %v32_v17 }
  0x1c   :  { %315 = vmatprep.subr.mxu0 %v31_v18 }
  0x1d   :  { %316 = vmatpush3.msra.mxu0 %v31_v18 }
  0x1e   :  { %317 = vmatprep.subr.mxu0 %v30_v19 }
  0x1f   :  { %318 = vmatpush3.msra.mxu0 %v30_v19 }
  0x20   :  { %319 = vmatprep.subr.mxu0 %v29_v20 }
  0x21   :  { %320 = vmatpush3.msra.mxu0 %v29_v20 }
  0x22   :  { %322 = vmatmul.mubr.f32.vlgmr.msra.gmra.mxu0 %v28_v21 }
  0xe2   :  { %v323_v27 = vpop.f32.mrf.mxu0 }
  0xe3   :  { %v124_v28 = vadd.f32 %v323_v27, %v257_v26 }
  0xe4   :  { %v118_v29 = vpop.f32.mrf.mxu0 }
  0xe5   :  { %v119_v30 = vadd.f32 %v257_v26, %v118_v29  ;;  %v128_v32 = vmax.f32 %v124_v28, 0.0 }
  0xe7   :  { %v127_v31 = vmax.f32 %v119_v30, 0.0 }
  0xe9   :  { %340 = vmatprep.mubr.msk.f32.mxu1 %vm139_vm0, %v127_v31 }
  0xea   :  { %341 = vmatmul.mubr.msk.f32.vlgmr.msra.gmra.mxu1 %vm139_vm0, %v128_v32 }
 0x1aa   :  { %v342_v34 = vpop.f32.mrf.mxu1 }
 0x1ab   :  { %v238_v35 = vadd.f32 %v342_v34, %v260_v33 }
 0x1ac   :  { %v212_v36 = vpop.f32.mrf.mxu1 }
 0x1ad   :  { %240 = vst [vmem:[#allocation3 + $0x8] sm:$0xff] %v238_v35  ;;  %v237_v37 = vadd.f32 %v260_v33, %v212_v36 }
 0x1af   :  { %239 = vst [vmem:[#allocation3] sm:$0xff] %v237_v37 }
 0x1b0   :  { %357 = shalt.err (!%p354_p4)
}
 0x1b1   :  { %s369_s23 = smov 128   ;;  %s370_s24 = smov 8  }
 0x1b2   :  { %252 = dma.vmem_to_hbm [thread:$0]  %s247_s22, 256, %s493_s5, [#allocation4], %s369_s23, %s369_s23, %s370_s24  }
 0x1b3   :  { %366 = dma.done.wait [#allocation4], 256  }
 0x1b4   :  { %367 = vsyncadd [#allocation4], 4294967040 }
 0x1b5   :  { %256 = vsyncpa [#allocation4], 1 }

</bundles_post_ra>
